<compile_context>
chip_gen: v7x
topology: tpu7x:2x2x1
jax: 0.10.0
libtpu: 0.0.40
codegen_flags: <defaults>
</compile_context>

<pallas_src>
import functools

import jax
import jax.numpy as jnp
from jax.experimental import pallas as pl
from jax.experimental.pallas import tpu as pltpu

IN_FEATURES = 390
OUT_FEATURES = 184
K_PAD = 512    # contraction dim padded to multiple of 128
N_PAD = 256    # output dim padded to multiple of 128 (lane-dense stores)


def _round_up(x, m):
    return (x + m - 1) // m * m


def ffn_kernel(x_ref, wt_ref, b_ref, o_ref):
    # x_ref: (TB, K_PAD)  wt_ref: (K_PAD, N_PAD)  b_ref: (1, N_PAD)  o_ref: (TB, N_PAD)
    x = x_ref[...]
    wt = wt_ref[...]
    b = b_ref[...]

    # Linear: logits = x @ W^T + b  (padded K columns of x / rows of wt are zero,
    # so the padded contraction is exact).
    logits = jnp.dot(x, wt, preferred_element_type=jnp.float32) + b

    # Tanh activation.
    h = jnp.tanh(logits)

    # Mask the 72 padded output columns before the row softmax so they do not
    # contribute to the max or the denominator.
    col = jax.lax.broadcasted_iota(jnp.int32, h.shape, 1)
    h = jnp.where(col < OUT_FEATURES, h, -1e30)

    # Numerically stable softmax over the feature axis.
    m = jnp.max(h, axis=1, keepdims=True)
    e = jnp.exp(h - m)
    denom = jnp.sum(e, axis=1, keepdims=True)
    inv = pl.reciprocal(denom, approx=False)
    o_ref[...] = (e * inv).astype(o_ref.dtype)


def prepare_params(weight, bias):
    """One-time: pre-transpose and zero-pad the PyTorch-layout params.

    weight: (184, 390) f32  ->  wt_padded: (512, 256) f32
    bias:   (184,)     f32  ->  b_padded:  (1, 256)   f32
    """
    wt = jnp.zeros((K_PAD, N_PAD), dtype=jnp.float32)
    wt = wt.at[:IN_FEATURES, :OUT_FEATURES].set(weight.T.astype(jnp.float32))
    b = jnp.zeros((1, N_PAD), dtype=jnp.float32)
    b = b.at[0, :OUT_FEATURES].set(bias.astype(jnp.float32))
    return wt, b


@functools.partial(jax.jit, static_argnames=("tile_b",))
def feed_forward_net(x, wt_padded, b_padded, *, tile_b=1024):
    """x: (B, 390) f32; wt_padded/b_padded from prepare_params()."""
    batch = x.shape[0]

    # Batch tile: multiple of 8 (sublane), capped at tile_b. Sized for v7x's
    # 64 MiB VMEM first: TB=1024 -> ~2 MiB x-tile + ~1 MiB out-tile,
    # double-buffered, + 0.5 MiB resident weights — well under default limits.
    tb = min(tile_b, _round_up(batch, 8))
    padded_b = _round_up(batch, tb)

    # Zero-pad batch rows (sliced off at the end) and K columns (exact).
    x_p = jnp.zeros((padded_b, K_PAD), dtype=jnp.float32)
    x_p = x_p.at[:batch, :IN_FEATURES].set(x.astype(jnp.float32))

    grid = (padded_b // tb,)

    out = pl.pallas_call(
        ffn_kernel,
        out_shape=jax.ShapeDtypeStruct((padded_b, N_PAD), jnp.float32),
        grid=grid,
        in_specs=[
            pl.BlockSpec((tb, K_PAD), lambda i: (i, 0)),        # batch-tiled x
            pl.BlockSpec((K_PAD, N_PAD), lambda i: (0, 0)),     # resident W^T
            pl.BlockSpec((1, N_PAD), lambda i: (0, 0)),         # resident bias
        ],
        out_specs=pl.BlockSpec((tb, N_PAD), lambda i: (i, 0)),
        compiler_params=pltpu.CompilerParams(
            dimension_semantics=("parallel",)),                 # 2 TCs on v7x
    )(x_p, wt_padded, b_padded)

    return out[:batch, :OUT_FEATURES]


def reference(x, weight, bias):
    logits = x @ weight.T + bias
    h = jnp.tanh(logits)
    return jax.nn.softmax(h, axis=1)


if __name__ == "__main__":
    key = jax.random.PRNGKey(0)
    k_x, k_w, k_b, k_x2 = jax.random.split(key, 4)

    # Deterministic parameter init matching nn.Linear's default scheme:
    # uniform(-1/sqrt(in_features), 1/sqrt(in_features)).
    bound = 1.0 / (IN_FEATURES ** 0.5)
    weight = jax.random.uniform(
        k_w, (OUT_FEATURES, IN_FEATURES), dtype=jnp.float32,
        minval=-bound, maxval=bound)
    bias = jax.random.uniform(
        k_b, (OUT_FEATURES,), dtype=jnp.float32, minval=-bound, maxval=bound)

    wt_padded, b_padded = prepare_params(weight, bias)

    # Small, module-consistent shapes.
    batch = 8
    x = jax.random.normal(k_x, (batch, IN_FEATURES), dtype=jnp.float32)

    out = feed_forward_net(x, wt_padded, b_padded)
    out = jax.block_until_ready(out)
    ref = reference(x, weight, bias)
    assert out.shape == (batch, OUT_FEATURES)
    assert jnp.allclose(out, ref, atol=1e-5, rtol=1e-5), "mismatch vs reference (B=8)"
    assert jnp.allclose(jnp.sum(out, axis=1), jnp.ones((batch,)), atol=1e-5)

    # Second case exercising the multi-tile grid + batch-padding path
    # (batch=20 with tile_b=8 -> grid of 3 tiles, 4 padded rows sliced off).
    batch2 = 20
    x2 = jax.random.normal(k_x2, (batch2, IN_FEATURES), dtype=jnp.float32)
    out2 = feed_forward_net(x2, wt_padded, b_padded, tile_b=8)
    out2 = jax.block_until_ready(out2)
    ref2 = reference(x2, weight, bias)
    assert out2.shape == (batch2, OUT_FEATURES)
    assert jnp.allclose(out2, ref2, atol=1e-5, rtol=1e-5), "mismatch vs reference (B=20)"
    assert jnp.allclose(jnp.sum(out2, axis=1), jnp.ones((batch2,)), atol=1e-5)

    print("KERNEL_OK")
</pallas_src>

<mosaic_0001>
module attributes {stable_mosaic.version = 11 : i64} {
  func.func @ffn_kernel(%arg0: i32, %arg1: memref<8x512xf32, #tpu.memory_space<vmem>>, %arg2: memref<512x256xf32, #tpu.memory_space<vmem>>, %arg3: memref<1x256xf32, #tpu.memory_space<vmem>>, %arg4: memref<8x256xf32, #tpu.memory_space<vmem>>) attributes {dimension_semantics = [#tpu.dimension_semantics<parallel>], iteration_bounds = array<i64: 1>, scalar_prefetch = 0 : i64, scratch_operands = 0 : i64, tpu.core_type = #tpu.core_type<tc>, window_params = [{transform_indices = @transform_0, window_bounds = array<i64: 8, 512>}, {pipeline_mode = #tpu.pipeline_mode<synchronous>, transform_indices = @transform_1, window_bounds = array<i64: 512, 256>}, {pipeline_mode = #tpu.pipeline_mode<synchronous>, transform_indices = @transform_2, window_bounds = array<i64: 1, 256>}, {transform_indices = @transform_3, window_bounds = array<i64: 8, 256>}]} {
    %c0 = arith.constant 0 : index
    %c0_0 = arith.constant 0 : index
    %0 = vector.load %arg1[%c0, %c0_0] : memref<8x512xf32, #tpu.memory_space<vmem>>, vector<8x512xf32>
    %c0_1 = arith.constant 0 : index
    %c0_2 = arith.constant 0 : index
    %1 = vector.load %arg2[%c0_1, %c0_2] : memref<512x256xf32, #tpu.memory_space<vmem>>, vector<512x256xf32>
    %c0_3 = arith.constant 0 : index
    %c0_4 = arith.constant 0 : index
    %2 = vector.load %arg3[%c0_3, %c0_4] : memref<1x256xf32, #tpu.memory_space<vmem>>, vector<1x256xf32>
    %cst = arith.constant dense<0.000000e+00> : vector<8x256xf32>
    %3 = tpu.matmul %0, %1, %cst {dimension_numbers = #tpu.dot_dimension_numbers<[1], [0], [0], [1], [0, 0, 1, 1], [], []>} : vector<8x512xf32>, vector<512x256xf32>, vector<8x256xf32> -> vector<8x256xf32>
    %4 = vector.broadcast %2 : vector<1x256xf32> to vector<8x256xf32>
    %5 = arith.addf %3, %4 : vector<8x256xf32>
    %6 = math.tanh %5 : vector<8x256xf32>
    %7 = tpu.iota {dimensions = array<i32: 1>} : vector<8x256xi32>
    %c184_i32 = arith.constant 184 : i32
    %8 = vector.broadcast %c184_i32 : i32 to vector<8x256xi32>
    %9 = arith.cmpi slt, %7, %8 : vector<8x256xi32>
    %cst_5 = arith.constant -1.000000e+30 : f32
    %10 = vector.broadcast %cst_5 : f32 to vector<8x256xf32>
    %11 = arith.select %9, %6, %10 : vector<8x256xi1>, vector<8x256xf32>
    %cst_6 = arith.constant dense<0xFF800000> : vector<8xf32>
    %12 = vector.multi_reduction <maximumf>, %11, %cst_6 [1] : vector<8x256xf32> to vector<8xf32>
    %13 = vector.shape_cast %12 : vector<8xf32> to vector<8x1xf32>
    %14 = vector.broadcast %13 : vector<8x1xf32> to vector<8x256xf32>
    %15 = arith.subf %11, %14 : vector<8x256xf32>
    %16 = math.exp %15 : vector<8x256xf32>
    %cst_7 = arith.constant dense<0.000000e+00> : vector<8xf32>
    %17 = vector.multi_reduction <add>, %16, %cst_7 [1] : vector<8x256xf32> to vector<8xf32>
    %18 = vector.shape_cast %17 : vector<8xf32> to vector<8x1xf32>
    %19 = tpu.reciprocal %18 : vector<8x1xf32> -> vector<8x1xf32>
    %20 = vector.broadcast %19 : vector<8x1xf32> to vector<8x256xf32>
    %21 = arith.mulf %16, %20 : vector<8x256xf32>
    %c0_8 = arith.constant 0 : index
    %c0_9 = arith.constant 0 : index
    %22 = vector.load %arg4[%c0_8, %c0_9] : memref<8x256xf32, #tpu.memory_space<vmem>>, vector<8x256xf32>
    tpu.vector_store %arg4[%c0_8, %c0_9], %21 {strides = array<i32>} : memref<8x256xf32, #tpu.memory_space<vmem>>, vector<8x256xf32>,
    return
  }
  func.func @transform_0(%arg0: i32) -> (i32, i32) {
    %c0_i32 = arith.constant 0 : i32
    %c0_i32_0 = arith.constant 0 : i32
    return %arg0, %c0_i32 : i32, i32
  }
  func.func @transform_1(%arg0: i32) -> (i32, i32) {
    %c0_i32 = arith.constant 0 : i32
    %c0_i32_0 = arith.constant 0 : i32
    %c0_i32_1 = arith.constant 0 : i32
    return %c0_i32, %c0_i32_0 : i32, i32
  }
  func.func @transform_2(%arg0: i32) -> (i32, i32) {
    %c0_i32 = arith.constant 0 : i32
    %c0_i32_0 = arith.constant 0 : i32
    %c0_i32_1 = arith.constant 0 : i32
    return %c0_i32, %c0_i32_0 : i32, i32
  }
  func.func @transform_3(%arg0: i32) -> (i32, i32) {
    %c0_i32 = arith.constant 0 : i32
    %c0_i32_0 = arith.constant 0 : i32
    return %arg0, %c0_i32 : i32, i32
  }
}

</mosaic_0001>

<bundles_post_ra>
// kernel: feed_forward_net.1
= control target key start
LH: loop header
LB: loop body
LE: loop exit
PB: predicated region body
PF: predicated region fallthrough
CT: control target
= control target key end

     0   :  { %8 = vsyncpa [#allocation3], 0  ;;  %s613_s0 = inlined_call_operand.vmem [shape: f32[8,512], index: 0, kind: input, shape index: {}]   ;;  %s614_s1 = inlined_call_operand.hbm [shape: f32[512,256], index: 1, kind: input, shape index: {}]   ;;  %s615_s2 = inlined_call_operand.vmem [shape: f32[1,256], index: 2, kind: input, shape index: {}]   ;;  %s616_s3 = inlined_call_operand.hbm [shape: f32[8,256], index: 3, kind: output, shape index: {}]  }
   0x1   :  { %9 = vsyncpa [#allocation4], 0  ;;  %s550_s12 = smov [#allocation2]   ;;  %s502_s16 = scalar_lea.hbm %s614_s1, 16384 }
   0x2   :  { %s17_s13 = sshll.u32 %s550_s12, 4  ;;  %p503_p0 = scmp.ne.s32.totalorder %s614_s1, %s502_s16  ;;  %s18_s13 = int_to_ptr.vmem [resolvable:$true] %s17_s13 }
   0x3   :  { %p506_p1 = scmp.lt.u32.totalorder %s502_s16, %s614_s1 }
   0x5   :  { %p508_p2 = pnand %p506_p1, %p503_p0 }
   0x7   :  { %511 = shalt.err (!%p508_p2)
}
   0x8   :  { %s512_s21 = scalar_lea.vmem %s18_s13, 16384  ;;  %p517_p4 = scmp.lt.s32.totalorder %s18_s13, %s18_s13 }
   0x9   :  { %p513_p3 = scmp.ne.s32.totalorder %s18_s13, %s512_s21  ;;  %p518_p5 = scmp.lt.s32.totalorder %s512_s21, %s512_s21 }
   0xb   :  { %p519_p6 = por %p518_p5, %p517_p4 }
   0xd   :  { %p520_p7 = pnand %p519_p6, %p513_p3 }
   0xf   :  { %523 = shalt.err (!%p520_p7)
}
  0x10   :  { %s551_s22 = smov 256   ;;  %s552_s23 = smov 16  }
  0x11   :  { %23 = dma.hbm_to_vmem [thread:$0]  %s614_s1, 16384, %s18_s13, [#allocation3], %s551_s22, %s551_s22, %s552_s23  }
  0x12   :  { %546 = dma.done.wait [#allocation3], 16384  }
  0x13   :  { %547 = vsyncadd [#allocation3], 4294950912  ;;  %v34_v0 = vld [vmem:[#allocation2 + $0x8] sm:$0xff]  ;;  %v36_v1 = vld [vmem:[#allocation2 + $0x18] sm:$0xff] }
  0x14   :  { %v33_v2 = vld [vmem:[#allocation2] sm:$0xff]  ;;  %v356_v3 = vpack.c.bf16 %v36_v1, %v34_v0  ;;  %v35_v4 = vld [vmem:[#allocation2 + $0x10] sm:$0xff]  ;;  %v98_v5 = vld [vmem:[#allocation2 + $0x208] sm:$0xff] }
  0x15   :  { %v100_v6 = vld [vmem:[#allocation2 + $0x218] sm:$0xff]  ;;  %v358_v7 = vpack.c.bf16 %v35_v4, %v33_v2  ;;  %v97_v9 = vld [vmem:[#allocation2 + $0x200] sm:$0xff]  ;;  %v99_v10 = vld [vmem:[#allocation2 + $0x210] sm:$0xff] }
  0x16   :  { %v420_v8 = vpack.c.bf16 %v100_v6, %v98_v5  ;;  %v38_v11 = vld [vmem:[#allocation2 + $0x28] sm:$0xff]  ;;  %357 = vmatprep.subr.bf16.mxu1 %v356_v3  ;;  %v422_v12 = vpack.c.bf16 %v99_v10, %v97_v9  ;;  %v40_v13 = vld [vmem:[#allocation2 + $0x38] sm:$0xff]  ;;  %v37_v14 = vld [vmem:[#allocation2 + $0x20] sm:$0xff] }
  0x17   :  { %v39_v15 = vld [vmem:[#allocation2 + $0x30] sm:$0xff]  ;;  %359 = vmatpush1.bf16.msra.mxu1 %v358_v7  ;;  %v360_v16 = vpack.c.bf16 %v40_v13, %v38_v11  ;;  %v102_v18 = vld [vmem:[#allocation2 + $0x228] sm:$0xff]  ;;  %v104_v19 = vld [vmem:[#allocation2 + $0x238] sm:$0xff] }
  0x18   :  { %421 = vmatprep.subr.bf16.mxu0 %v420_v8  ;;  %v362_v17 = vpack.c.bf16 %v39_v15, %v37_v14  ;;  %v101_v20 = vld [vmem:[#allocation2 + $0x220] sm:$0xff]  ;;  %v424_v21 = vpack.c.bf16 %v104_v19, %v102_v18  ;;  %v103_v22 = vld [vmem:[#allocation2 + $0x230] sm:$0xff]  ;;  %v42_v23 = vld [vmem:[#allocation2 + $0x48] sm:$0xff] }
  0x19   :  { %423 = vmatpush1.bf16.msra.mxu0 %v422_v12  ;;  %v44_v24 = vld [vmem:[#allocation2 + $0x58] sm:$0xff]  ;;  %361 = vmatprep.subr.bf16.mxu1 %v360_v16  ;;  %v426_v25 = vpack.c.bf16 %v103_v22, %v101_v20  ;;  %v41_v27 = vld [vmem:[#allocation2 + $0x40] sm:$0xff]  ;;  %v43_v28 = vld [vmem:[#allocation2 + $0x50] sm:$0xff] }
  0x1a   :  { %v364_v26 = vpack.c.bf16 %v44_v24, %v42_v23  ;;  %v106_v29 = vld [vmem:[#allocation2 + $0x248] sm:$0xff]  ;;  %425 = vmatprep.subr.bf16.mxu0 %v424_v21  ;;  %v108_v30 = vld [vmem:[#allocation2 + $0x258] sm:$0xff]  ;;  %v105_v31 = vld [vmem:[#allocation2 + $0x240] sm:$0xff]  ;;  %v366_v33 = vpack.c.bf16 %v43_v28, %v41_v27 }
  0x1b   :  { %v107_v32 = vld [vmem:[#allocation2 + $0x250] sm:$0xff]  ;;  %363 = vmatpush1.bf16.msra.mxu1 %v362_v17  ;;  %v428_v34 = vpack.c.bf16 %v108_v30, %v106_v29  ;;  %v46_v35 = vld [vmem:[#allocation2 + $0x68] sm:$0xff]  ;;  %v48_v36 = vld [vmem:[#allocation2 + $0x78] sm:$0xff] }
  0x1c   :  { %v45_v37 = vld [vmem:[#allocation2 + $0x60] sm:$0xff]  ;;  %365 = vmatprep.subr.bf16.mxu1 %v364_v26  ;;  %v430_v38 = vpack.c.bf16 %v107_v32, %v105_v31  ;;  %v368_v39 = vpack.c.bf16 %v48_v36, %v46_v35  ;;  %v47_v40 = vld [vmem:[#allocation2 + $0x70] sm:$0xff]  ;;  %v110_v41 = vld [vmem:[#allocation2 + $0x268] sm:$0xff] }
  0x1d   :  { %427 = vmatpush1.bf16.msra.mxu0 %v426_v25  ;;  %v112_v42 = vld [vmem:[#allocation2 + $0x278] sm:$0xff]  ;;  %v109_v44 = vld [vmem:[#allocation2 + $0x260] sm:$0xff]  ;;  %v111_v45 = vld [vmem:[#allocation2 + $0x270] sm:$0xff]  ;;  %v370_v48 = vpack.c.bf16 %v47_v40, %v45_v37 }
  0x1e   :  { %429 = vmatprep.subr.bf16.mxu0 %v428_v34  ;;  %v432_v43 = vpack.c.bf16 %v112_v42, %v110_v41  ;;  %v50_v46 = vld [vmem:[#allocation2 + $0x88] sm:$0xff]  ;;  %v52_v47 = vld [vmem:[#allocation2 + $0x98] sm:$0xff]  ;;  %v434_v51 = vpack.c.bf16 %v111_v45, %v109_v44  ;;  %v49_v53 = vld [vmem:[#allocation2 + $0x80] sm:$0xff] }
  0x1f   :  { %367 = vmatpush1.bf16.msra.mxu1 %v366_v33  ;;  %v114_v49 = vld [vmem:[#allocation2 + $0x288] sm:$0xff]  ;;  %v116_v50 = vld [vmem:[#allocation2 + $0x298] sm:$0xff]  ;;  %v372_v52 = vpack.c.bf16 %v52_v47, %v50_v46  ;;  %v51_v54 = vld [vmem:[#allocation2 + $0x90] sm:$0xff] }
  0x20   :  { %369 = vmatprep.subr.bf16.mxu1 %v368_v39  ;;  %v113_v55 = vld [vmem:[#allocation2 + $0x280] sm:$0xff]  ;;  %v436_v56 = vpack.c.bf16 %v116_v50, %v114_v49  ;;  %v115_v57 = vld [vmem:[#allocation2 + $0x290] sm:$0xff]  ;;  %v54_v58 = vld [vmem:[#allocation2 + $0xa8] sm:$0xff]  ;;  %v374_v62 = vpack.c.bf16 %v51_v54, %v49_v53 }
  0x21   :  { %431 = vmatpush1.bf16.msra.mxu0 %v430_v38  ;;  %v56_v59 = vld [vmem:[#allocation2 + $0xb8] sm:$0xff]  ;;  %v118_v60 = vld [vmem:[#allocation2 + $0x2a8] sm:$0xff]  ;;  %v438_v63 = vpack.c.bf16 %v115_v57, %v113_v55  ;;  %v53_v1 = vld [vmem:[#allocation2 + $0xa0] sm:$0xff] }
  0x22   :  { %433 = vmatprep.subr.bf16.mxu0 %v432_v43  ;;  %v120_v61 = vld [vmem:[#allocation2 + $0x2b8] sm:$0xff]  ;;  %v376_v0 = vpack.c.bf16 %v56_v59, %v54_v58  ;;  %v55_v2 = vld [vmem:[#allocation2 + $0xb0] sm:$0xff]  ;;  %v117_v3 = vld [vmem:[#allocation2 + $0x2a0] sm:$0xff] }
  0x23   :  { %371 = vmatpush1.bf16.msra.mxu1 %v370_v48  ;;  %v440_v4 = vpack.c.bf16 %v120_v61, %v118_v60  ;;  %v119_v5 = vld [vmem:[#allocation2 + $0x2b0] sm:$0xff]  ;;  %v58_v6 = vld [vmem:[#allocation2 + $0xc8] sm:$0xff]  ;;  %v60_v7 = vld [vmem:[#allocation2 + $0xd8] sm:$0xff]  ;;  %v378_v10 = vpack.c.bf16 %v55_v2, %v53_v1 }
  0x24   :  { %373 = vmatprep.subr.bf16.mxu1 %v372_v52  ;;  %v122_v8 = vld [vmem:[#allocation2 + $0x2c8] sm:$0xff]  ;;  %v124_v9 = vld [vmem:[#allocation2 + $0x2d8] sm:$0xff]  ;;  %v442_v11 = vpack.c.bf16 %v119_v5, %v117_v3  ;;  %v380_v12 = vpack.c.bf16 %v60_v7, %v58_v6  ;;  %v57_v13 = vld [vmem:[#allocation2 + $0xc0] sm:$0xff] }
  0x25   :  { %435 = vmatpush1.bf16.msra.mxu0 %v434_v51  ;;  %v59_v14 = vld [vmem:[#allocation2 + $0xd0] sm:$0xff]  ;;  %v121_v15 = vld [vmem:[#allocation2 + $0x2c0] sm:$0xff]  ;;  %v444_v16 = vpack.c.bf16 %v124_v9, %v122_v8  ;;  %v62_v18 = vld [vmem:[#allocation2 + $0xe8] sm:$0xff] }
  0x26   :  { %437 = vmatprep.subr.bf16.mxu0 %v436_v56  ;;  %v123_v17 = vld [vmem:[#allocation2 + $0x2d0] sm:$0xff]  ;;  %v64_v19 = vld [vmem:[#allocation2 + $0xf8] sm:$0xff]  ;;  %v126_v20 = vld [vmem:[#allocation2 + $0x2e8] sm:$0xff]  ;;  %v382_v22 = vpack.c.bf16 %v59_v14, %v57_v13 }
  0x27   :  { %375 = vmatpush1.bf16.msra.mxu1 %v374_v62  ;;  %v128_v21 = vld [vmem:[#allocation2 + $0x2f8] sm:$0xff]  ;;  %v446_v23 = vpack.c.bf16 %v123_v17, %v121_v15  ;;  %v384_v24 = vpack.c.bf16 %v64_v19, %v62_v18  ;;  %v61_v25 = vld [vmem:[#allocation2 + $0xe0] sm:$0xff]  ;;  %v63_v26 = vld [vmem:[#allocation2 + $0xf0] sm:$0xff] }
  0x28   :  { %377 = vmatprep.subr.bf16.mxu1 %v376_v0  ;;  %v125_v27 = vld [vmem:[#allocation2 + $0x2e0] sm:$0xff]  ;;  %v448_v28 = vpack.c.bf16 %v128_v21, %v126_v20  ;;  %v127_v29 = vld [vmem:[#allocation2 + $0x2f0] sm:$0xff]  ;;  %v66_v30 = vld [vmem:[#allocation2 + $0x108] sm:$0xff]  ;;  %v386_v34 = vpack.c.bf16 %v63_v26, %v61_v25 }
  0x29   :  { %439 = vmatpush1.bf16.msra.mxu0 %v438_v63  ;;  %v68_v31 = vld [vmem:[#allocation2 + $0x118] sm:$0xff]  ;;  %v130_v32 = vld [vmem:[#allocation2 + $0x308] sm:$0xff]  ;;  %v450_v35 = vpack.c.bf16 %v127_v29, %v125_v27  ;;  %v65_v37 = vld [vmem:[#allocation2 + $0x100] sm:$0xff] }
  0x2a   :  { %441 = vmatprep.subr.bf16.mxu0 %v440_v4  ;;  %v132_v33 = vld [vmem:[#allocation2 + $0x318] sm:$0xff]  ;;  %v388_v36 = vpack.c.bf16 %v68_v31, %v66_v30  ;;  %v67_v38 = vld [vmem:[#allocation2 + $0x110] sm:$0xff]  ;;  %v129_v39 = vld [vmem:[#allocation2 + $0x300] sm:$0xff] }
  0x2b   :  { %379 = vmatpush1.bf16.msra.mxu1 %v378_v10  ;;  %v452_v40 = vpack.c.bf16 %v132_v33, %v130_v32  ;;  %v131_v41 = vld [vmem:[#allocation2 + $0x310] sm:$0xff]  ;;  %v70_v42 = vld [vmem:[#allocation2 + $0x128] sm:$0xff]  ;;  %v72_v43 = vld [vmem:[#allocation2 + $0x138] sm:$0xff]  ;;  %v390_v46 = vpack.c.bf16 %v67_v38, %v65_v37 }
  0x2c   :  { %381 = vmatprep.subr.bf16.mxu1 %v380_v12  ;;  %v134_v44 = vld [vmem:[#allocation2 + $0x328] sm:$0xff]  ;;  %v136_v45 = vld [vmem:[#allocation2 + $0x338] sm:$0xff]  ;;  %v454_v47 = vpack.c.bf16 %v131_v41, %v129_v39  ;;  %v392_v48 = vpack.c.bf16 %v72_v43, %v70_v42  ;;  %v69_v49 = vld [vmem:[#allocation2 + $0x120] sm:$0xff] }
  0x2d   :  { %443 = vmatpush1.bf16.msra.mxu0 %v442_v11  ;;  %v71_v50 = vld [vmem:[#allocation2 + $0x130] sm:$0xff]  ;;  %v133_v51 = vld [vmem:[#allocation2 + $0x320] sm:$0xff]  ;;  %v456_v52 = vpack.c.bf16 %v136_v45, %v134_v44  ;;  %v74_v54 = vld [vmem:[#allocation2 + $0x148] sm:$0xff] }
  0x2e   :  { %445 = vmatprep.subr.bf16.mxu0 %v444_v16  ;;  %v135_v53 = vld [vmem:[#allocation2 + $0x330] sm:$0xff]  ;;  %v76_v55 = vld [vmem:[#allocation2 + $0x158] sm:$0xff]  ;;  %v138_v56 = vld [vmem:[#allocation2 + $0x348] sm:$0xff]  ;;  %v394_v58 = vpack.c.bf16 %v71_v50, %v69_v49 }
  0x2f   :  { %383 = vmatpush1.bf16.msra.mxu1 %v382_v22  ;;  %v140_v57 = vld [vmem:[#allocation2 + $0x358] sm:$0xff]  ;;  %v458_v59 = vpack.c.bf16 %v135_v53, %v133_v51  ;;  %v396_v60 = vpack.c.bf16 %v76_v55, %v74_v54  ;;  %v73_v61 = vld [vmem:[#allocation2 + $0x140] sm:$0xff]  ;;  %v75_v62 = vld [vmem:[#allocation2 + $0x150] sm:$0xff] }
  0x30   :  { %385 = vmatprep.subr.bf16.mxu1 %v384_v24  ;;  %v137_v63 = vld [vmem:[#allocation2 + $0x340] sm:$0xff]  ;;  %v460_v0 = vpack.c.bf16 %v140_v57, %v138_v56  ;;  %v139_v1 = vld [vmem:[#allocation2 + $0x350] sm:$0xff]  ;;  %v78_v2 = vld [vmem:[#allocation2 + $0x168] sm:$0xff]  ;;  %v398_v6 = vpack.c.bf16 %v75_v62, %v73_v61 }
  0x31   :  { %447 = vmatpush1.bf16.msra.mxu0 %v446_v23  ;;  %v80_v3 = vld [vmem:[#allocation2 + $0x178] sm:$0xff]  ;;  %v142_v4 = vld [vmem:[#allocation2 + $0x368] sm:$0xff]  ;;  %v77_v7 = vld [vmem:[#allocation2 + $0x160] sm:$0xff]  ;;  %v462_v8 = vpack.c.bf16 %v139_v1, %v137_v63 }
  0x32   :  { %449 = vmatprep.subr.bf16.mxu0 %v448_v28  ;;  %v144_v5 = vld [vmem:[#allocation2 + $0x378] sm:$0xff]  ;;  %v400_v9 = vpack.c.bf16 %v80_v3, %v78_v2  ;;  %v79_v10 = vld [vmem:[#allocation2 + $0x170] sm:$0xff]  ;;  %v141_v11 = vld [vmem:[#allocation2 + $0x360] sm:$0xff] }
  0x33   :  { %387 = vmatpush1.bf16.msra.mxu1 %v386_v34  ;;  %v143_v12 = vld [vmem:[#allocation2 + $0x370] sm:$0xff]  ;;  %v464_v13 = vpack.c.bf16 %v144_v5, %v142_v4  ;;  %v82_v14 = vld [vmem:[#allocation2 + $0x188] sm:$0xff]  ;;  %v84_v15 = vld [vmem:[#allocation2 + $0x198] sm:$0xff]  ;;  %v402_v20 = vpack.c.bf16 %v79_v10, %v77_v7  ;;  %v163_v4 = vlaneseq }
  0x34   :  { %389 = vmatprep.subr.bf16.mxu1 %v388_v36  ;;  %v30_v16 = vld [vmem:[%s613_s0 + $0x8] sm:$0xff]  ;;  %v148_v18 = vld [vmem:[#allocation2 + $0x398] sm:$0xff]  ;;  %v466_v21 = vpack.c.bf16 %v143_v12, %v141_v11  ;;  %v404_v22 = vpack.c.bf16 %v84_v15, %v82_v14  ;;  %v81_v23 = vld [vmem:[#allocation2 + $0x180] sm:$0xff] }
  0x35   :  { %451 = vmatpush1.bf16.msra.mxu0 %v450_v35  ;;  %v146_v17 = vld [vmem:[#allocation2 + $0x388] sm:$0xff]  ;;  %237 = vmatprep.mubr.f32.mxu1 %v30_v16  ;;  %v32_v19 = vld [vmem:[%s613_s0 + $0x18] sm:$0xff]  ;;  %v83_v24 = vld [vmem:[#allocation2 + $0x190] sm:$0xff]  ;;  %v164_v5 = vshrl.u32 %v163_v4, 7 }
  0x36   :  { %453 = vmatprep.subr.bf16.mxu0 %v452_v40  ;;  %308 = vmatprep.mubr.f32.mxu0 %v32_v19  ;;  %v145_v25 = vld [vmem:[#allocation2 + $0x380] sm:$0xff]  ;;  %v468_v26 = vpack.c.bf16 %v148_v18, %v146_v17  ;;  %v147_v27 = vld [vmem:[#allocation2 + $0x390] sm:$0xff]  ;;  %v86_v28 = vld [vmem:[#allocation2 + $0x1a8] sm:$0xff]  ;;  %v406_v32 = vpack.c.bf16 %v83_v24, %v81_v23  ;;  %v318_v19 = vand.u32 127, %v163_v4 }
  0x37   :  { %391 = vmatpush1.bf16.msra.mxu1 %v390_v46  ;;  %v88_v29 = vld [vmem:[#allocation2 + $0x1b8] sm:$0xff]  ;;  %v150_v30 = vld [vmem:[#allocation2 + $0x3a8] sm:$0xff]  ;;  %v470_v33 = vpack.c.bf16 %v147_v27, %v145_v25  ;;  %v85_v35 = vld [vmem:[#allocation2 + $0x1a0] sm:$0xff] }
  0x38   :  { %393 = vmatprep.subr.bf16.mxu1 %v392_v48  ;;  %v152_v31 = vld [vmem:[#allocation2 + $0x3b8] sm:$0xff]  ;;  %v408_v34 = vpack.c.bf16 %v88_v29, %v86_v28  ;;  %v87_v36 = vld [vmem:[#allocation2 + $0x1b0] sm:$0xff]  ;;  %v149_v37 = vld [vmem:[#allocation2 + $0x3a0] sm:$0xff] }
  0x39   :  { %455 = vmatpush1.bf16.msra.mxu0 %v454_v47  ;;  %v472_v38 = vpack.c.bf16 %v152_v31, %v150_v30  ;;  %v151_v39 = vld [vmem:[#allocation2 + $0x3b0] sm:$0xff]  ;;  %v90_v40 = vld [vmem:[#allocation2 + $0x1c8] sm:$0xff]  ;;  %v92_v41 = vld [vmem:[#allocation2 + $0x1d8] sm:$0xff]  ;;  %v410_v44 = vpack.c.bf16 %v87_v36, %v85_v35 }
  0x3a   :  { %457 = vmatprep.subr.bf16.mxu0 %v456_v52  ;;  %v154_v42 = vld [vmem:[#allocation2 + $0x3c8] sm:$0xff]  ;;  %v156_v43 = vld [vmem:[#allocation2 + $0x3d8] sm:$0xff]  ;;  %v474_v45 = vpack.c.bf16 %v151_v39, %v149_v37  ;;  %v412_v46 = vpack.c.bf16 %v92_v41, %v90_v40  ;;  %v89_v47 = vld [vmem:[#allocation2 + $0x1c0] sm:$0xff] }
  0x3b   :  { %395 = vmatpush1.bf16.msra.mxu1 %v394_v58  ;;  %v91_v48 = vld [vmem:[#allocation2 + $0x1d0] sm:$0xff]  ;;  %v153_v49 = vld [vmem:[#allocation2 + $0x3c0] sm:$0xff]  ;;  %v476_v50 = vpack.c.bf16 %v156_v43, %v154_v42  ;;  %v94_v52 = vld [vmem:[#allocation2 + $0x1e8] sm:$0xff] }
  0x3c   :  { %397 = vmatprep.subr.bf16.mxu1 %v396_v60  ;;  %v155_v51 = vld [vmem:[#allocation2 + $0x3d0] sm:$0xff]  ;;  %v96_v53 = vld [vmem:[#allocation2 + $0x1f8] sm:$0xff]  ;;  %v158_v54 = vld [vmem:[#allocation2 + $0x3e8] sm:$0xff]  ;;  %v414_v56 = vpack.c.bf16 %v91_v48, %v89_v47 }
  0x3d   :  { %459 = vmatpush1.bf16.msra.mxu0 %v458_v59  ;;  %v160_v55 = vld [vmem:[#allocation2 + $0x3f8] sm:$0xff]  ;;  %v478_v57 = vpack.c.bf16 %v155_v51, %v153_v49  ;;  %v416_v58 = vpack.c.bf16 %v96_v53, %v94_v52  ;;  %v93_v59 = vld [vmem:[#allocation2 + $0x1e0] sm:$0xff]  ;;  %v95_v60 = vld [vmem:[#allocation2 + $0x1f0] sm:$0xff] }
  0x3e   :  { %461 = vmatprep.subr.bf16.mxu0 %v460_v0  ;;  %v480_v61 = vpack.c.bf16 %v160_v55, %v158_v54  ;;  %v157_v62 = vld [vmem:[#allocation2 + $0x3e0] sm:$0xff]  ;;  %v159_v63 = vld [vmem:[#allocation2 + $0x3f0] sm:$0xff]  ;;  %v418_v0 = vpack.c.bf16 %v95_v60, %v93_v59 }
  0x3f   :  { %399 = vmatpush1.bf16.msra.mxu1 %v398_v6  ;;  %v482_v1 = vpack.c.bf16 %v159_v63, %v157_v62  ;;  %v29_v2 = vld [vmem:[%s613_s0] sm:$0xff]  ;;  %v31_v3 = vld [vmem:[%s613_s0 + $0x10] sm:$0xff]  ;;  %v165_v6 = vsub.s32 0, %v164_v5  ;;  %s553_s0 = smov [#allocation5]  }
  0x40   :  { %401 = vmatprep.subr.bf16.mxu1 %v400_v9  ;;  %v161_v7 = vld [vmem:[%s615_s2] sm:$0x3]  ;;  %s347_s2 = sshll.u32 %s553_s0, 4  ;;  %s348_s2 = int_to_ptr.vmem [resolvable:$true] %s347_s2 }
  0x41   :  { %463 = vmatpush1.bf16.msra.mxu0 %v462_v8  ;;  %v169_v8 = vsub.s32 1, %v164_v5  ;;  %v166_v9 = vrot.slane %v161_v7, %v165_v6  ;;  %s524_s8 = scalar_lea.vmem %s348_s2, 256  ;;  %p529_p9 = scmp.lt.s32.totalorder %s348_s2, %s348_s2 }
  0x42   :  { %465 = vmatprep.subr.bf16.mxu0 %v464_v13  ;;  %p525_p8 = scmp.ne.s32.totalorder %s348_s2, %s524_s8  ;;  %p530_p10 = scmp.lt.s32.totalorder %s524_s8, %s524_s8 }
  0x43   :  { %403 = vmatpush1.bf16.msra.mxu1 %v402_v20  ;;  %v170_v10 = vrot.slane %v161_v7, %v169_v8  ;;  %v319_v20 = vadd.s32 128, %v318_v19 }
  0x44   :  { %405 = vmatprep.subr.bf16.mxu1 %v404_v22  ;;  %p531_p11 = por %p530_p10, %p529_p9 }
  0x45   :  { %467 = vmatpush1.bf16.msra.mxu0 %v466_v21  ;;  %vm321_vm0 = vcmp.lt.s32.totalorder %v319_v20, 184 }
  0x46   :  { %469 = vmatprep.subr.bf16.mxu0 %v468_v26  ;;  %p532_p12 = pnand %p531_p11, %p525_p8 }
  0x47   :  { %407 = vmatpush1.bf16.msra.mxu1 %v406_v32 }
  0x48   :  { %409 = vmatprep.subr.bf16.mxu1 %v408_v34 }
  0x49   :  { %471 = vmatpush1.bf16.msra.mxu0 %v470_v33 }
  0x4a   :  { %473 = vmatprep.subr.bf16.mxu0 %v472_v38 }
  0x4b   :  { %411 = vmatpush1.bf16.msra.mxu1 %v410_v44 }
  0x4c   :  { %413 = vmatprep.subr.bf16.mxu1 %v412_v46 }
  0x4d   :  { %475 = vmatpush1.bf16.msra.mxu0 %v474_v45 }
  0x4e   :  { %477 = vmatprep.subr.bf16.mxu0 %v476_v50 }
  0x4f   :  { %415 = vmatpush1.bf16.msra.mxu1 %v414_v56 }
  0x50   :  { %417 = vmatprep.subr.bf16.mxu1 %v416_v58 }
  0x51   :  { %479 = vmatpush1.bf16.msra.mxu0 %v478_v57 }
  0x52   :  { %481 = vmatprep.subr.bf16.mxu0 %v480_v61 }
  0x53   :  { %419 = vmatpush1.bf16.msra.mxu1 %v418_v0 }
  0x55   :  { %483 = vmatpush1.bf16.msra.mxu0 %v482_v1 }
  0x56   :  { %238 = vmatmul.mubr.f32.vlgmr.msra.gmra.mrb[0].mxu1 %v29_v2 }
  0x58   :  { %309 = vmatmul.mubr.f32.vlgmr.msra.gmra.mrb[0].mxu0 %v31_v3 }
 0x129   :  { %v239_v11 = vpop.f32.mrb[0].mxu1 }
 0x12a   :  { %v240_v12 = vadd.f32 %v239_v11, %v166_v9  ;;  %v241_v13 = vpop.f32.mrb[1].mxu1 }
 0x12b   :  { %v310_v14 = vpop.f32.mrb[0].mxu0  ;;  %v242_v15 = vadd.f32 %v241_v13, %v170_v10 }
 0x12c   :  { %v312_v16 = vpop.f32.mrb[1].mxu0  ;;  %v311_v17 = vadd.f32 %v310_v14, %v240_v12 }
 0x12d   :  { %v313_v18 = vadd.f32 %v312_v16, %v242_v15 }
 0x12f   :  { %492 = vtanh.f32 %v313_v18 }
 0x130   :  { %494 = vtanh.f32 %v311_v17 }
 0x139   :  { %v493_v21 = vpop.eup %492 }
 0x13a   :  { %v495_v22 = vpop.eup %494  ;;  %v323_v23 = vsel %vm321_vm0, %v493_v21, -1e+30 }
 0x13b   :  { %v324_v24 = vmax.f32 %v495_v22, %v323_v23 }
 0x13d   :  { %325 = vmax.xlane.f32.xlu0 %v324_v24 }
 0x1ca   :  { %v326_v25 = vpop.xlane.xlu0 %325 }
 0x1cb   :  { %v327_v26 = vsub.f32 %v495_v22, %v326_v25  ;;  %v328_v27 = vsub.f32 %v323_v23, %v326_v25 }
 0x1cd   :  { %v329_v28 = vmul.f32 1.442695, %v327_v26  ;;  %v331_v29 = vmul.f32 1.442695, %v328_v27 }
 0x1cf   :  { %496 = vpow2.f32 %v329_v28 }
 0x1d0   :  { %498 = vpow2.f32 %v331_v29 }
 0x1d9   :  { %v497_v30 = vpop.eup %496 }
 0x1da   :  { %v499_v31 = vpop.eup %498 }
 0x1db   :  { %v333_v32 = vadd.f32 %v499_v31, %v497_v30 }
 0x1dd   :  { %334 = vadd.xlane.f32.xlu0 %v333_v32 }
 0x26a   :  { %v335_v33 = vpop.xlane.xlu0 %334 }
 0x26b   :  { %500 = vrcp.f32 %v335_v33 }
 0x275   :  { %v501_v34 = vpop.eup %500 }
 0x276   :  { %v337_v35 = vmul.f32 %v501_v34, %v497_v30  ;;  %v338_v36 = vmul.f32 %v501_v34, %v499_v31 }
 0x278   :  { %339 = vst [vmem:[#allocation5] sm:$0xff] %v337_v35  ;;  %340 = vst [vmem:[#allocation5 + $0x8] sm:$0xff] %v338_v36 }
 0x279   :  { %535 = shalt.err (!%p532_p12)
}
 0x27a   :  { %s536_s11 = scalar_lea.hbm %s616_s3, 256 }
 0x27b   :  { %p537_p13 = scmp.ne.s32.totalorder %s616_s3, %s536_s11  ;;  %p540_p0 = scmp.lt.u32.totalorder %s536_s11, %s616_s3 }
 0x27d   :  { %p542_p1 = pnand %p540_p0, %p537_p13 }
 0x27f   :  { %545 = shalt.err (!%p542_p1)
}
 0x280   :  { %350 = dma.vmem_to_hbm [thread:$0]  %s348_s2, 256, %s616_s3, [#allocation4]  }
 0x281   :  { %548 = dma.done.wait [#allocation4], 256  }
 0x282   :  { %549 = vsyncadd [#allocation4], 4294967040 }
 0x283   :  { %354 = vsyncpa [#allocation3], 1 }
 0x284   :  { %355 = vsyncpa [#allocation4], 1 }

</bundles_post_ra>
